<compile_context>
chip_gen: v7x
topology: tpu7x:2x2x1
jax: 0.10.0
libtpu: 0.0.40
codegen_flags: <defaults>
</compile_context>

<pallas_src>
import functools

import jax
import jax.numpy as jnp
from jax.experimental import pallas as pl
from jax.experimental.pallas import tpu as pltpu


# ----------------------------------------------------------------------------
# Fused Pallas kernel: all conv branches + ReLU + max-pool + FC in one pass
# ----------------------------------------------------------------------------
def _fused_textcnn_kernel(filter_sizes, num_filters, emb_ref, *refs):
    """Fused TextCNN forward for one batch block.

    emb_ref          : (TB, L, E) f32
    refs[:n]         : per-branch im2col conv weights, (k_i*E, F) f32
    refs[n]          : stacked conv biases, (n, F) f32
    refs[n+1]        : fc weight, (n*F, C) f32
    refs[n+2]        : fc bias, (1, C) f32
    refs[n+3]        : output, (TB, C) f32
    """
    n = len(filter_sizes)
    w_refs = refs[:n]
    bias_ref = refs[n]
    fcw_ref = refs[n + 1]
    fcb_ref = refs[n + 2]
    out_ref = refs[n + 3]

    emb = emb_ref[...]                      # (TB, L, E)
    TB, L, _ = emb.shape
    F = num_filters
    C = out_ref.shape[-1]

    # FC bias folded into the accumulator init (no separate broadcast+add later).
    acc = jnp.broadcast_to(fcb_ref[...], (TB, C)).astype(jnp.float32)

    # Static loop over branches (filter sizes are compile-time constants).
    for i, k in enumerate(filter_sizes):
        T = L - k + 1                       # valid conv positions
        # im2col: one lane-axis concat of the k shifted views -> a single matmul
        # with contraction depth k*E instead of k tiny depth-E matmuls.
        cols = jnp.concatenate(
            [emb[:, j:j + T, :] for j in range(k)], axis=-1)        # (TB, T, k*E)
        conv = jnp.einsum("btk,kf->btf", cols, w_refs[i][...],
                          preferred_element_type=jnp.float32)       # (TB, T, F)
        act = jnp.maximum(conv + bias_ref[i:i + 1, :], 0.0)         # bias + ReLU
        pooled = jnp.max(act, axis=1)                               # (TB, F)
        # concat(pooled_i) @ fc_w  ==  sum_i pooled_i @ fc_w[i*F:(i+1)*F]
        acc = acc + jnp.dot(pooled, fcw_ref[i * F:(i + 1) * F, :],
                            preferred_element_type=jnp.float32)
    out_ref[...] = acc.astype(out_ref.dtype)


def textcnn_fused(emb, conv_w2, conv_b, fc_w, fc_b, *,
                  filter_sizes, num_filters, block_b=512):
    """Single fused pallas_call for the whole TextCNN head."""
    B, L, E = emb.shape
    C = fc_w.shape[-1]
    assert L >= max(filter_sizes), "seq_len must be >= max(filter_sizes)"

    # Batch block: full batch for small B, otherwise 512-row (8-aligned) tiles so
    # DMAs pipeline and the grid shards across TensorCores (v7x megacore).
    TB = B if B <= block_b else block_b
    grid = (pl.cdiv(B, TB),)

    def _resident(shape):
        # Whole-array, grid-invariant block: stays resident in VMEM.
        return pl.BlockSpec(shape, lambda b, _s=shape: (0,) * len(_s))

    in_specs = [pl.BlockSpec((TB, L, E), lambda b: (b, 0, 0))]
    in_specs += [_resident(w.shape) for w in conv_w2]
    in_specs += [_resident(conv_b.shape), _resident(fc_w.shape), _resident(fc_b.shape)]

    kernel = functools.partial(_fused_textcnn_kernel, tuple(filter_sizes), num_filters)

    return pl.pallas_call(
        kernel,
        out_shape=jax.ShapeDtypeStruct((B, C), jnp.float32),
        grid=grid,
        in_specs=in_specs,
        out_specs=pl.BlockSpec((TB, C), lambda b: (b, 0)),
        compiler_params=pltpu.CompilerParams(
            dimension_semantics=("parallel",)),
    )(emb, *conv_w2, conv_b, fc_w, fc_b)


# ----------------------------------------------------------------------------
# Forward pass
# ----------------------------------------------------------------------------
@jax.jit
def textcnn_forward(token_ids, params):
    # Embedding lookup (gather) — glue, kept in plain JAX (see TODO above).
    emb = params["embedding"][token_ids]                      # (B, L, E)

    conv_w = params["conv_w"]                                 # list of (k, E, F)
    filter_sizes = tuple(int(w.shape[0]) for w in conv_w)
    num_filters = int(conv_w[0].shape[-1])
    # im2col weight layout: W2[j*E + e, f] = W_torch[f, 0, j, e]  (free reshape in XLA)
    conv_w2 = [w.reshape(w.shape[0] * w.shape[1], w.shape[2]) for w in conv_w]
    conv_b = jnp.concatenate(params["conv_b"], axis=0)        # (n_branches, F)

    # Dropout: identity at inference.
    return textcnn_fused(emb, conv_w2, conv_b, params["fc_w"], params["fc_b"],
                         filter_sizes=filter_sizes, num_filters=num_filters)


# ----------------------------------------------------------------------------
# Deterministic parameter init (mirrors shapes of the PyTorch module)
# ----------------------------------------------------------------------------
def init_params(key, n_vocab, embed, num_filters, filter_sizes, num_classes):
    keys = jax.random.split(key, 2 + 2 * len(filter_sizes) + 2)
    ki = iter(keys)

    embedding = jax.random.normal(next(ki), (n_vocab, embed), jnp.float32) * 0.1
    # padding_idx = n_vocab - 1 row is zero (matches nn.Embedding(padding_idx=...)).
    embedding = embedding.at[n_vocab - 1].set(0.0)

    conv_w, conv_b = [], []
    for k in filter_sizes:
        # PyTorch Conv2d weight (F, 1, k, E) stored here as (k, E, F).
        conv_w.append(jax.random.normal(next(ki), (k, embed, num_filters), jnp.float32) * 0.1)
        conv_b.append(jax.random.normal(next(ki), (1, num_filters), jnp.float32) * 0.1)

    f_total = num_filters * len(filter_sizes)
    fc_w = jax.random.normal(next(ki), (f_total, num_classes), jnp.float32) * 0.1
    fc_b = jax.random.normal(next(ki), (1, num_classes), jnp.float32) * 0.1

    return {
        "embedding": embedding,
        "conv_w": conv_w,
        "conv_b": conv_b,
        "fc_w": fc_w,
        "fc_b": fc_b,
    }


# ----------------------------------------------------------------------------
# Main
# ----------------------------------------------------------------------------
if __name__ == "__main__":
    # Small config consistent with the module.
    n_vocab = 50
    embed = 32
    num_filters = 8
    filter_sizes = (2, 3, 4)
    num_classes = 5
    batch = 2
    seq_len = 8

    key = jax.random.PRNGKey(0)
    k_param, k_tok = jax.random.split(key)

    params = init_params(k_param, n_vocab, embed, num_filters, filter_sizes, num_classes)
    token_ids = jax.random.randint(k_tok, (batch, seq_len), 0, n_vocab, dtype=jnp.int32)

    out = textcnn_forward(token_ids, params)
    out = jax.block_until_ready(out)
    assert out.shape == (batch, num_classes)

    # Reference check in plain JAX (same math) for sanity.
    emb = params["embedding"][token_ids]
    ref_pooled = []
    for i, k in enumerate(filter_sizes):
        T = seq_len - k + 1
        acc = jnp.zeros((batch, T, num_filters), jnp.float32)
        for j in range(k):
            acc = acc + jnp.einsum("bte,ef->btf", emb[:, j:j + T, :], params["conv_w"][i][j])
        acc = acc + params["conv_b"][i][0][None, None, :]
        ref_pooled.append(jnp.max(jnp.maximum(acc, 0.0), axis=1))
    ref = jnp.concatenate(ref_pooled, axis=1) @ params["fc_w"] + params["fc_b"]
    assert jnp.allclose(out, ref, atol=1e-5, rtol=1e-5)

    print("KERNEL_OK")
</pallas_src>

<mosaic_0001>
module attributes {stable_mosaic.version = 11 : i64} {
  func.func @_fused_textcnn_kernel(%arg0: i32, %arg1: memref<2x8x32xf32, #tpu.memory_space<vmem>>, %arg2: memref<64x8xf32, #tpu.memory_space<vmem>>, %arg3: memref<96x8xf32, #tpu.memory_space<vmem>>, %arg4: memref<128x8xf32, #tpu.memory_space<vmem>>, %arg5: memref<3x8xf32, #tpu.memory_space<vmem>>, %arg6: memref<24x5xf32, #tpu.memory_space<vmem>>, %arg7: memref<1x5xf32, #tpu.memory_space<vmem>>, %arg8: memref<2x5xf32, #tpu.memory_space<vmem>>) attributes {dimension_semantics = [#tpu.dimension_semantics<parallel>], iteration_bounds = array<i64: 1>, scalar_prefetch = 0 : i64, scratch_operands = 0 : i64, tpu.core_type = #tpu.core_type<tc>, window_params = [{transform_indices = @transform_0, window_bounds = array<i64: 2, 8, 32>}, {pipeline_mode = #tpu.pipeline_mode<synchronous>, transform_indices = @transform_1, window_bounds = array<i64: 64, 8>}, {pipeline_mode = #tpu.pipeline_mode<synchronous>, transform_indices = @transform_2, window_bounds = array<i64: 96, 8>}, {pipeline_mode = #tpu.pipeline_mode<synchronous>, transform_indices = @transform_3, window_bounds = array<i64: 128, 8>}, {pipeline_mode = #tpu.pipeline_mode<synchronous>, transform_indices = @transform_4, window_bounds = array<i64: 3, 8>}, {pipeline_mode = #tpu.pipeline_mode<synchronous>, transform_indices = @transform_5, window_bounds = array<i64: 24, 5>}, {pipeline_mode = #tpu.pipeline_mode<synchronous>, transform_indices = @transform_6, window_bounds = array<i64: 1, 5>}, {transform_indices = @transform_7, window_bounds = array<i64: 2, 5>}]} {
    %c0 = arith.constant 0 : index
    %c0_0 = arith.constant 0 : index
    %c0_1 = arith.constant 0 : index
    %0 = vector.load %arg1[%c0, %c0_0, %c0_1] : memref<2x8x32xf32, #tpu.memory_space<vmem>>, vector<2x8x32xf32>
    %c0_2 = arith.constant 0 : index
    %c0_3 = arith.constant 0 : index
    %1 = vector.load %arg7[%c0_2, %c0_3] : memref<1x5xf32, #tpu.memory_space<vmem>>, vector<1x5xf32>
    %2 = vector.shape_cast %1 : vector<1x5xf32> to vector<1x5xf32>
    %3 = vector.broadcast %2 : vector<1x5xf32> to vector<2x5xf32>
    %4 = vector.extract_strided_slice %0 {offsets = [0, 0, 0], sizes = [2, 7, 32], strides = [1, 1, 1]} : vector<2x8x32xf32> to vector<2x7x32xf32>
    %5 = vector.extract_strided_slice %0 {offsets = [0, 1, 0], sizes = [2, 7, 32], strides = [1, 1, 1]} : vector<2x8x32xf32> to vector<2x7x32xf32>
    %6 = tpu.concatenate %4, %5 in 2 : vector<2x7x32xf32>, vector<2x7x32xf32> -> vector<2x7x64xf32>
    %c0_4 = arith.constant 0 : index
    %c0_5 = arith.constant 0 : index
    %7 = vector.load %arg2[%c0_4, %c0_5] : memref<64x8xf32, #tpu.memory_space<vmem>>, vector<64x8xf32>
    "tpu.trace_start"() <{level = 10 : i32, message = "btk,kf->btf"}> : () -> ()
    %cst = arith.constant dense<0.000000e+00> : vector<2x7x8xf32>
    %8 = tpu.matmul %6, %7, %cst {dimension_numbers = #tpu.dot_dimension_numbers<[2], [0], [0, 1], [1], [0, 0, 0, 1, 1, 1], [], []>} : vector<2x7x64xf32>, vector<64x8xf32>, vector<2x7x8xf32> -> vector<2x7x8xf32>
    "tpu.trace_stop"() : () -> ()
    %c0_6 = arith.constant 0 : index
    %c0_7 = arith.constant 0 : index
    %9 = vector.load %arg5[%c0_6, %c0_7] : memref<3x8xf32, #tpu.memory_space<vmem>>, vector<1x8xf32>
    %10 = vector.shape_cast %9 : vector<1x8xf32> to vector<1x1x8xf32>
    %11 = vector.broadcast %10 : vector<1x1x8xf32> to vector<2x7x8xf32>
    %12 = arith.addf %8, %11 : vector<2x7x8xf32>
    %cst_8 = arith.constant 0.000000e+00 : f32
    %13 = vector.broadcast %cst_8 : f32 to vector<2x7x8xf32>
    %14 = arith.maximumf %12, %13 : vector<2x7x8xf32>
    %cst_9 = arith.constant dense<0xFF800000> : vector<2x8xf32>
    %15 = vector.multi_reduction <maximumf>, %14, %cst_9 [1] : vector<2x7x8xf32> to vector<2x8xf32>
    %c0_10 = arith.constant 0 : index
    %c0_11 = arith.constant 0 : index
    %16 = vector.load %arg6[%c0_10, %c0_11] : memref<24x5xf32, #tpu.memory_space<vmem>>, vector<8x5xf32>
    %cst_12 = arith.constant dense<0.000000e+00> : vector<2x5xf32>
    %17 = tpu.matmul %15, %16, %cst_12 {dimension_numbers = #tpu.dot_dimension_numbers<[1], [0], [0], [1], [0, 0, 1, 1], [], []>} : vector<2x8xf32>, vector<8x5xf32>, vector<2x5xf32> -> vector<2x5xf32>
    %18 = arith.addf %3, %17 : vector<2x5xf32>
    %19 = vector.extract_strided_slice %0 {offsets = [0, 0, 0], sizes = [2, 6, 32], strides = [1, 1, 1]} : vector<2x8x32xf32> to vector<2x6x32xf32>
    %20 = vector.extract_strided_slice %0 {offsets = [0, 1, 0], sizes = [2, 6, 32], strides = [1, 1, 1]} : vector<2x8x32xf32> to vector<2x6x32xf32>
    %21 = vector.extract_strided_slice %0 {offsets = [0, 2, 0], sizes = [2, 6, 32], strides = [1, 1, 1]} : vector<2x8x32xf32> to vector<2x6x32xf32>
    %22 = tpu.concatenate %19, %20, %21 in 2 : vector<2x6x32xf32>, vector<2x6x32xf32>, vector<2x6x32xf32> -> vector<2x6x96xf32>
    %c0_13 = arith.constant 0 : index
    %c0_14 = arith.constant 0 : index
    %23 = vector.load %arg3[%c0_13, %c0_14] : memref<96x8xf32, #tpu.memory_space<vmem>>, vector<96x8xf32>
    "tpu.trace_start"() <{level = 10 : i32, message = "btk,kf->btf"}> : () -> ()
    %cst_15 = arith.constant dense<0.000000e+00> : vector<2x6x8xf32>
    %24 = tpu.matmul %22, %23, %cst_15 {dimension_numbers = #tpu.dot_dimension_numbers<[2], [0], [0, 1], [1], [0, 0, 0, 1, 1, 1], [], []>} : vector<2x6x96xf32>, vector<96x8xf32>, vector<2x6x8xf32> -> vector<2x6x8xf32>
    "tpu.trace_stop"() : () -> ()
    %c1 = arith.constant 1 : index
    %c0_16 = arith.constant 0 : index
    %25 = vector.load %arg5[%c1, %c0_16] : memref<3x8xf32, #tpu.memory_space<vmem>>, vector<1x8xf32>
    %26 = vector.shape_cast %25 : vector<1x8xf32> to vector<1x1x8xf32>
    %27 = vector.broadcast %26 : vector<1x1x8xf32> to vector<2x6x8xf32>
    %28 = arith.addf %24, %27 : vector<2x6x8xf32>
    %cst_17 = arith.constant 0.000000e+00 : f32
    %29 = vector.broadcast %cst_17 : f32 to vector<2x6x8xf32>
    %30 = arith.maximumf %28, %29 : vector<2x6x8xf32>
    %cst_18 = arith.constant dense<0xFF800000> : vector<2x8xf32>
    %31 = vector.multi_reduction <maximumf>, %30, %cst_18 [1] : vector<2x6x8xf32> to vector<2x8xf32>
    %c8 = arith.constant 8 : index
    %c0_19 = arith.constant 0 : index
    %32 = vector.load %arg6[%c8, %c0_19] : memref<24x5xf32, #tpu.memory_space<vmem>>, vector<8x5xf32>
    %cst_20 = arith.constant dense<0.000000e+00> : vector<2x5xf32>
    %33 = tpu.matmul %31, %32, %cst_20 {dimension_numbers = #tpu.dot_dimension_numbers<[1], [0], [0], [1], [0, 0, 1, 1], [], []>} : vector<2x8xf32>, vector<8x5xf32>, vector<2x5xf32> -> vector<2x5xf32>
    %34 = arith.addf %18, %33 : vector<2x5xf32>
    %35 = vector.extract_strided_slice %0 {offsets = [0, 0, 0], sizes = [2, 5, 32], strides = [1, 1, 1]} : vector<2x8x32xf32> to vector<2x5x32xf32>
    %36 = vector.extract_strided_slice %0 {offsets = [0, 1, 0], sizes = [2, 5, 32], strides = [1, 1, 1]} : vector<2x8x32xf32> to vector<2x5x32xf32>
    %37 = vector.extract_strided_slice %0 {offsets = [0, 2, 0], sizes = [2, 5, 32], strides = [1, 1, 1]} : vector<2x8x32xf32> to vector<2x5x32xf32>
    %38 = vector.extract_strided_slice %0 {offsets = [0, 3, 0], sizes = [2, 5, 32], strides = [1, 1, 1]} : vector<2x8x32xf32> to vector<2x5x32xf32>
    %39 = tpu.concatenate %35, %36, %37, %38 in 2 : vector<2x5x32xf32>, vector<2x5x32xf32>, vector<2x5x32xf32>, vector<2x5x32xf32> -> vector<2x5x128xf32>
    %c0_21 = arith.constant 0 : index
    %c0_22 = arith.constant 0 : index
    %40 = vector.load %arg4[%c0_21, %c0_22] : memref<128x8xf32, #tpu.memory_space<vmem>>, vector<128x8xf32>
    "tpu.trace_start"() <{level = 10 : i32, message = "btk,kf->btf"}> : () -> ()
    %cst_23 = arith.constant dense<0.000000e+00> : vector<2x5x8xf32>
    %41 = tpu.matmul %39, %40, %cst_23 {dimension_numbers = #tpu.dot_dimension_numbers<[2], [0], [0, 1], [1], [0, 0, 0, 1, 1, 1], [], []>} : vector<2x5x128xf32>, vector<128x8xf32>, vector<2x5x8xf32> -> vector<2x5x8xf32>
    "tpu.trace_stop"() : () -> ()
    %c2 = arith.constant 2 : index
    %c0_24 = arith.constant 0 : index
    %42 = vector.load %arg5[%c2, %c0_24] : memref<3x8xf32, #tpu.memory_space<vmem>>, vector<1x8xf32>
    %43 = vector.shape_cast %42 : vector<1x8xf32> to vector<1x1x8xf32>
    %44 = vector.broadcast %43 : vector<1x1x8xf32> to vector<2x5x8xf32>
    %45 = arith.addf %41, %44 : vector<2x5x8xf32>
    %cst_25 = arith.constant 0.000000e+00 : f32
    %46 = vector.broadcast %cst_25 : f32 to vector<2x5x8xf32>
    %47 = arith.maximumf %45, %46 : vector<2x5x8xf32>
    %cst_26 = arith.constant dense<0xFF800000> : vector<2x8xf32>
    %48 = vector.multi_reduction <maximumf>, %47, %cst_26 [1] : vector<2x5x8xf32> to vector<2x8xf32>
    %c16 = arith.constant 16 : index
    %c0_27 = arith.constant 0 : index
    %49 = vector.load %arg6[%c16, %c0_27] : memref<24x5xf32, #tpu.memory_space<vmem>>, vector<8x5xf32>
    %cst_28 = arith.constant dense<0.000000e+00> : vector<2x5xf32>
    %50 = tpu.matmul %48, %49, %cst_28 {dimension_numbers = #tpu.dot_dimension_numbers<[1], [0], [0], [1], [0, 0, 1, 1], [], []>} : vector<2x8xf32>, vector<8x5xf32>, vector<2x5xf32> -> vector<2x5xf32>
    %51 = arith.addf %34, %50 : vector<2x5xf32>
    %c0_29 = arith.constant 0 : index
    %c0_30 = arith.constant 0 : index
    %52 = vector.load %arg8[%c0_29, %c0_30] : memref<2x5xf32, #tpu.memory_space<vmem>>, vector<2x5xf32>
    tpu.vector_store %arg8[%c0_29, %c0_30], %51 {strides = array<i32>} : memref<2x5xf32, #tpu.memory_space<vmem>>, vector<2x5xf32>,
    return
  }
  func.func @transform_0(%arg0: i32) -> (i32, i32, i32) {
    %c0_i32 = arith.constant 0 : i32
    %c0_i32_0 = arith.constant 0 : i32
    %c0_i32_1 = arith.constant 0 : i32
    return %arg0, %c0_i32, %c0_i32_0 : i32, i32, i32
  }
  func.func @transform_1(%arg0: i32) -> (i32, i32) {
    %c0_i32 = arith.constant 0 : i32
    %c0_i32_0 = arith.constant 0 : i32
    %c0_i32_1 = arith.constant 0 : i32
    return %c0_i32, %c0_i32_0 : i32, i32
  }
  func.func @transform_2(%arg0: i32) -> (i32, i32) {
    %c0_i32 = arith.constant 0 : i32
    %c0_i32_0 = arith.constant 0 : i32
    %c0_i32_1 = arith.constant 0 : i32
    return %c0_i32, %c0_i32_0 : i32, i32
  }
  func.func @transform_3(%arg0: i32) -> (i32, i32) {
    %c0_i32 = arith.constant 0 : i32
    %c0_i32_0 = arith.constant 0 : i32
    %c0_i32_1 = arith.constant 0 : i32
    return %c0_i32, %c0_i32_0 : i32, i32
  }
  func.func @transform_4(%arg0: i32) -> (i32, i32) {
    %c0_i32 = arith.constant 0 : i32
    %c0_i32_0 = arith.constant 0 : i32
    %c0_i32_1 = arith.constant 0 : i32
    return %c0_i32, %c0_i32_0 : i32, i32
  }
  func.func @transform_5(%arg0: i32) -> (i32, i32) {
    %c0_i32 = arith.constant 0 : i32
    %c0_i32_0 = arith.constant 0 : i32
    %c0_i32_1 = arith.constant 0 : i32
    return %c0_i32, %c0_i32_0 : i32, i32
  }
  func.func @transform_6(%arg0: i32) -> (i32, i32) {
    %c0_i32 = arith.constant 0 : i32
    %c0_i32_0 = arith.constant 0 : i32
    %c0_i32_1 = arith.constant 0 : i32
    return %c0_i32, %c0_i32_0 : i32, i32
  }
  func.func @transform_7(%arg0: i32) -> (i32, i32) {
    %c0_i32 = arith.constant 0 : i32
    %c0_i32_0 = arith.constant 0 : i32
    return %arg0, %c0_i32 : i32, i32
  }
}

</mosaic_0001>

<bundles_post_ra>
// kernel: textcnn_forward.1
= control target key start
LH: loop header
LB: loop body
LE: loop exit
PB: predicated region body
PF: predicated region fallthrough
CT: control target
= control target key end

     0   :  { %s2099_s9 = smov 64   ;;  %s2100_s10 = smov 32   ;;  %s2503_s0 = inlined_call_operand.vmem [shape: f32[2,8,32], index: 0, kind: input, shape index: {}]   ;;  %s2504_s1 = inlined_call_operand.vmem [shape: f32[64,8], index: 1, kind: input, shape index: {}]   ;;  %s2505_s2 = inlined_call_operand.vmem [shape: f32[96,8], index: 2, kind: input, shape index: {}]   ;;  %s2506_s3 = inlined_call_operand.vmem [shape: f32[128,8], index: 3, kind: input, shape index: {}]   ;;  %s2507_s4 = inlined_call_operand.vmem [shape: f32[3,8], index: 4, kind: input, shape index: {}]   ;;  %s2508_s5 = inlined_call_operand.vmem [shape: f32[24,5], index: 5, kind: input, shape index: {}]   ;;  %s2509_s6 = inlined_call_operand.vmem [shape: f32[1,5], index: 6, kind: input, shape index: {}]   ;;  %s2510_s7 = inlined_call_operand.hbm [shape: f32[2,5], index: 7, kind: output, shape index: {}]  }
   0x1   :  { %v27_v0 = vld [vmem:[%s2503_s0] sm:$0xff]  ;;  %v2153_v1 = vld [vmem:[%s2503_s0 + $0x8] sm:$0xff]  ;;  %v51_v9 = vld [vmem:[%s2504_s1 + $0x10] sm:$0xff] }
   0x2   :  { %v49_v2 = vld [vmem:[%s2504_s1] sm:$0xff]  ;;  %v801_v3 = vrot.slane %v27_v0, 2  ;;  %v38_v4 = vrot.slane %v27_v0, 1  ;;  %v50_v5 = vld [vmem:[%s2504_s1 + $0x8] sm:$0xff]  ;;  %v802_v6 = vrot.slane %v2153_v1, 2  ;;  %v39_v7 = vrot.slane %v2153_v1, 1 }
   0x3   :  { %v1990_v8 = vpack.c.bf16 %v50_v5, %v49_v2  ;;  %v52_v10 = vld [vmem:[%s2504_s1 + $0x18] sm:$0xff] }
   0x4   :  { %803 = vrot.lane.b32.xlu1 %v801_v3, %s2099_s9  ;;  %40 = vrot.lane.b32.xlu0 %v38_v4, %s2100_s10  ;;  %v1994_v11 = vpack.c.bf16 %v52_v10, %v51_v9 }
   0x5   :  { %12 = vsyncpa [#allocation3], 0  ;;  %1991 = vmatprep.subr.bf16.mxu0 %v1990_v8  ;;  %v1183_v12 = vrot.slane %v2153_v1, 3  ;;  %v1182_v13 = vrot.slane %v27_v0, 3  ;;  %v53_v14 = vld [vmem:[%s2504_s1 + $0x20] sm:$0xff]  ;;  %v54_v15 = vld [vmem:[%s2504_s1 + $0x28] sm:$0xff]  ;;  %v68_v25 = vlaneseq }
   0x6   :  { %1993 = vmatpush3.bf16.msra.mxu0 %v1990_v8  ;;  %v1998_v16 = vpack.c.bf16 %v54_v15, %v53_v14  ;;  %s2101_s18 = smov 96   ;;  %v55_v17 = vld [vmem:[%s2504_s1 + $0x30] sm:$0xff]  ;;  %v56_v18 = vld [vmem:[%s2504_s1 + $0x38] sm:$0xff]  ;;  %v1192_v20 = vld [vmem:[%s2506_s3] sm:$0xff]  ;;  %v2102_v23 = vmov 1966171168  }
   0x7   :  { %1995 = vmatprep.subr.bf16.mxu0 %v1994_v11  ;;  %v2002_v19 = vpack.c.bf16 %v56_v18, %v55_v17  ;;  %v1193_v21 = vld [vmem:[%s2506_s3 + $0x8] sm:$0xff]  ;;  %v66_v24 = vunpack.c.l.s4 %v2102_v23  ;;  %v2103_v26 = vmov 1983009808   ;;  %v69_v29 = vshrl.u32 %v68_v25, 7  ;;  %s2106_s14 = smov [#allocation2]  }
   0x8   :  { %805 = vrot.lane.b32.xlu1 %v802_v6, %s2099_s9  ;;  %42 = vrot.lane.b32.xlu0 %v39_v7, %s2100_s10  ;;  %v2188_v22 = vpack.c.bf16 %v1193_v21, %v1192_v20  ;;  %v832_v27 = vunpack.c.l.s4 %v2103_v26  ;;  %vm46_vm0 = vcmask 261120   ;;  %vm389_vm1 = vcmask 523264   ;;  %s1823_s15 = sshll.u32 %s2106_s14, 4  ;;  %s1824_s15 = int_to_ptr.vmem [resolvable:$true] %s1823_s15 }
   0x9   :  { %v67_v28 = vunpack.c.0.s8 %v66_v24  ;;  %vm931_vm2 = vcmask 785408   ;;  %vm2105_vm3 = vmmov 0   ;;  %vm707_vm4 = vcmask 63488   ;;  %p2080_p1 = scmp.lt.s32.totalorder %s1824_s15, %s1824_s15 }
   0xa   :  { %1997 = vmatpush3.bf16.msra.mxu0 %v1994_v11  ;;  %v833_v30 = vunpack.c.0.s8 %v832_v27  ;;  %vm725_vm5 = vcmask 1041409   ;;  %vm727_vm6 = vcmask 64512   ;;  %vm1723_vm7 = vcmask 61440  }
   0xb   :  { %1999 = vmatprep.subr.bf16.mxu0 %v1998_v16  ;;  %v2191_v31 = vsub.s32 %v67_v28, %v69_v29  ;;  %vm1090_vm8 = vcmask 62464   ;;  %vm1815_vm9 = vcmask 33792  }
   0xc   :  { %1186 = vrot.lane.b32.xlu1 %v1183_v12, %s2101_s18  ;;  %1184 = vrot.lane.b32.xlu0 %v1182_v13, %s2101_s18  ;;  %v2193_v35 = vsub.s32 %v833_v30, %v69_v29 }
   0xe   :  { %2001 = vmatpush3.bf16.msra.mxu0 %v1998_v16 }
   0xf   :  { %2003 = vmatprep.subr.bf16.mxu0 %v2002_v19 }
  0x12   :  { %2005 = vmatpush3.bf16.msra.mxu0 %v2002_v19 }
  0x13   :  { %2031 = vmatprep.subr.bf16.mxu0 %v2188_v22 }
  0x76   :  { %v804_v32 = vpop.permute.xlu1 %803  ;;  %v41_v33 = vpop.permute.xlu0 %40 }
  0x77   :  { %v47_v34 = vsel %vm46_vm0, %v27_v0, %v41_v33 }
  0x78   :  { %v64_v36 = vcombine.high %v47_v34, %v47_v34  ;;  %v71_v37 = vrot.slane %v47_v34, %v2191_v31  ;;  %v809_v38 = vsel %vm389_vm1, %v47_v34, %v804_v32 }
  0x79   :  { %v837_v44 = vrot.slane %v809_v38, %v2193_v35  ;;  %v830_v53 = vcombine.high %v809_v38, %v809_v38 }
  0x7a   :  { %v78_v39 = vrot.slane %v64_v36, %v2191_v31  ;;  %v79_v40 = vcombine.high %v71_v37, %v71_v37  ;;  %v806_v41 = vpop.permute.xlu1 %805  ;;  %v43_v42 = vpop.permute.xlu0 %42  ;;  %v87_v50 = vrot.slane %v71_v37, %v2191_v31 }
  0x7b   :  { %v48_v43 = vsel %vm46_vm0, %v2153_v1, %v43_v42  ;;  %v845_v57 = vcombine.high %v837_v44, %v837_v44  ;;  %v844_v4 = vrot.slane %v830_v53, %v2193_v35  ;;  %v1194_v53 = vld [vmem:[%s2506_s3 + $0x10] sm:$0xff] }
  0x7c   :  { %v80_v45 = vcombine.high %v78_v39, %v78_v39  ;;  %v94_v46 = vrot.slane %v78_v39, %v2191_v31  ;;  %v112_v47 = vcombine.high %v48_v43, %v48_v43  ;;  %v119_v48 = vrot.slane %v48_v43, %v2191_v31 }
  0x7d   :  { %v2203_v49 = vsel %vm389_vm1, %v48_v43, %v806_v41  ;;  %v101_v51 = vrot.slane %v79_v40, %v2191_v31  ;;  %v879_v12 = vcombine.low %v837_v44, %v845_v57 }
  0x7e   :  { %v1187_v52 = vpop.permute.xlu1 %1186  ;;  %v126_v54 = vrot.slane %v112_v47, %v2191_v31  ;;  %v127_v55 = vcombine.high %v119_v48, %v119_v48  ;;  %v135_v56 = vrot.slane %v119_v48, %v2191_v31  ;;  %v1185_v58 = vpop.permute.xlu0 %1184  ;;  %v108_v59 = vrot.slane %v80_v45, %v2191_v31 }
  0x7f   :  { %v110_v60 = vcombine.high %v94_v46, %v94_v46  ;;  %v2212_v61 = vrot.slane %v2203_v49, %v2193_v35  ;;  %v2216_v62 = vsel %vm931_vm2, %v2203_v49, %v1187_v52  ;;  %v209_v3 = vcombine.low %v87_v50, %v101_v51 }
  0x80   :  { %v128_v63 = vcombine.high %v126_v54, %v126_v54  ;;  %v142_v0 = vrot.slane %v126_v54, %v2191_v31  ;;  %v149_v1 = vrot.slane %v127_v55, %v2191_v31  ;;  %v157_v2 = vcombine.high %v135_v56, %v135_v56  ;;  %v1195_v54 = vld [vmem:[%s2506_s3 + $0x18] sm:$0xff] }
  0x81   :  { %v1190_v5 = vsel %vm931_vm2, %v809_v38, %v1185_v58  ;;  %v1833_v6 = vcombine.high %v87_v50, %v101_v51  ;;  %v1261_v11 = vrot.slane %v2216_v62, %v2191_v31  ;;  %v880_v13 = vcombine.low %v844_v4, %v2212_v61  ;;  %v1197_v4 = vld [vmem:[%s2506_s3 + $0x28] sm:$0xff] }
  0x82   :  { %v156_v7 = vrot.slane %v128_v63, %v2191_v31  ;;  %v158_v8 = vcombine.high %v142_v0, %v142_v0  ;;  %v159_v9 = vcombine.high %v149_v1, %v149_v1  ;;  %v258_v10 = vcombine.low %v149_v1, %v157_v2 }
  0x83   :  { %v212_v14 = vcombine.low %v110_v60, %v135_v56  ;;  %v1215_v16 = vcombine.high %v1190_v5, %v1190_v5  ;;  %v211_v17 = vcombine.low %v94_v46, %v108_v59  ;;  %v1269_v19 = vcombine.high %v1261_v11, %v1261_v11 }
  0x84   :  { %v259_v15 = vcombine.low %v159_v9, %v142_v0  ;;  %v260_v18 = vcombine.low %v156_v7, %v158_v8  ;;  %v1276_v20 = vrot.slane %v1261_v11, %v2191_v31  ;;  %v1222_v21 = vrot.slane %v1190_v5, %v2191_v31  ;;  %v1198_v9 = vld [vmem:[%s2506_s3 + $0x30] sm:$0xff] }
  0x85   :  { %v1229_v24 = vrot.slane %v1215_v16, %v2191_v31  ;;  %v219_v25 = vrot.slane %v209_v3, %v2191_v31  ;;  %v226_v26 = vrot.slane %v1833_v6, %v2191_v31  ;;  %v267_v27 = vrot.slane %v258_v10, %v2191_v31  ;;  %v1196_v3 = vld [vmem:[%s2506_s3 + $0x20] sm:$0xff]  ;;  %v1199_v10 = vld [vmem:[%s2506_s3 + $0x38] sm:$0xff] }
  0x86   :  { %v274_v23 = vrot.slane %v259_v15, %v2191_v31  ;;  %v2234_v28 = vrot.slane %v1269_v19, %v2191_v31  ;;  %v1291_v29 = vcombine.high %v1276_v20, %v1276_v20  ;;  %v1230_v30 = vcombine.high %v1222_v21, %v1222_v21  ;;  %v1203_v15 = vld [vmem:[%s2506_s3 + $0x58] sm:$0xff]  ;;  %v1205_v19 = vld [vmem:[%s2506_s3 + $0x68] sm:$0xff] }
  0x87   :  { %v1244_v32 = vrot.slane %v1229_v24, %v2191_v31  ;;  %v233_v33 = vrot.slane %v211_v17, %v2191_v31  ;;  %v240_v34 = vrot.slane %v212_v14, %v2191_v31  ;;  %v241_v36 = vcombine.low %v219_v25, %v226_v26  ;;  %v1202_v14 = vld [vmem:[%s2506_s3 + $0x50] sm:$0xff]  ;;  %v1207_v24 = vld [vmem:[%s2506_s3 + $0x78] sm:$0xff] }
  0x88   :  { %v1336_v37 = vcombine.low %v2234_v28, %v1291_v29  ;;  %v1237_v38 = vrot.slane %v1222_v21, %v2191_v31  ;;  %v1251_v39 = vrot.slane %v1230_v30, %v2191_v31  ;;  %v281_v40 = vrot.slane %v260_v18, %v2191_v31  ;;  %v1204_v18 = vld [vmem:[%s2506_s3 + $0x60] sm:$0xff] }
  0x89   :  { %v1335_v41 = vcombine.low %v1244_v32, %v1276_v20  ;;  %v242_v42 = vcombine.low %v233_v33, %v240_v34  ;;  %v282_v43 = vcombine.low %v267_v27, %v274_v23  ;;  %v249_v46 = vrot.slane %v241_v36, %v2191_v31  ;;  %v811_v30 = vld [vmem:[%s2505_s2] sm:$0xff]  ;;  %v812_v32 = vld [vmem:[%s2505_s2 + $0x8] sm:$0xff] }
  0x8a   :  { %v1333_v44 = vcombine.low %v1237_v38, %v1251_v39  ;;  %v1843_v45 = vcombine.high %v1237_v38, %v1251_v39  ;;  %v296_v47 = vrot.slane %v281_v40, %v2191_v31  ;;  %v1364_v52 = vrot.slane %v1336_v37, %v2191_v31  ;;  %v722_v34 = vld [vmem:[%s2508_s5] sm:$0xff] }
  0x8b   :  { %v256_v48 = vrot.slane %v242_v42, %v2191_v31  ;;  %v289_v50 = vrot.slane %v282_v43, %v2191_v31  ;;  %v1357_v51 = vrot.slane %v1335_v41, %v2191_v31  ;;  %v887_v57 = vrot.slane %v879_v12, %v2193_v35  ;;  %v1200_v12 = vld [vmem:[%s2506_s3 + $0x40] sm:$0xff] }
  0x8c   :  { %v1343_v55 = vrot.slane %v1333_v44, %v2191_v31  ;;  %v1350_v56 = vrot.slane %v1843_v45, %v2191_v31  ;;  %v894_v63 = vrot.slane %v880_v13, %v2193_v35  ;;  %v2034_v1 = vpack.c.bf16 %v1195_v54, %v1194_v53  ;;  %v1832_v37 = vld [vmem:[%s2507_s4] ss:$0 sm:$0xff] }
  0x8d   :  { %v257_v58 = vcombine.low %v249_v46, %v256_v48  ;;  %v297_v59 = vcombine.low %v289_v50, %v296_v47  ;;  %v1366_v60 = vcombine.low %v1357_v51, %v1364_v52  ;;  %v2038_v8 = vpack.c.bf16 %v1197_v4, %v1196_v3  ;;  %v1842_v4 = vld [vmem:[%s2507_s4 + $0x2] ss:$0 sm:$0xff] }
  0x8e   :  { %v1365_v0 = vcombine.low %v1343_v55, %v1350_v56  ;;  %v2267_v5 = vcombine.low %v887_v57, %v894_v63  ;;  %v2042_v11 = vpack.c.bf16 %v1199_v10, %v1198_v9  ;;  %v1254_v16 = vcombine.high %v2216_v62, %v2216_v62  ;;  %v1206_v62 = vld [vmem:[%s2506_s3 + $0x70] sm:$0xff] }
  0x8f   :  { %1910 = vmatprep.mubr.msk.f32.mxu0 %vm389_vm1, %v257_v58  ;;  %v1380_v2 = vrot.slane %v1366_v60, %v2191_v31  ;;  %v2050_v17 = vpack.c.bf16 %v1203_v15, %v1202_v14  ;;  %v1292_v21 = vcombine.high %v2234_v28, %v2234_v28  ;;  %v2054_v23 = vpack.c.bf16 %v1205_v19, %v1204_v18 }
  0x90   :  { %1911 = vmatmul.mubr.msk.f32.vlgmr.msra.gmra.mrb[0].mxu0 %vm389_vm1, %v297_v59  ;;  %v1373_v6 = vrot.slane %v1365_v0, %v2191_v31  ;;  %v1268_v20 = vrot.slane %v1254_v16, %v2191_v31  ;;  %v2058_v27 = vpack.c.bf16 %v1207_v24, %v1206_v62  ;;  %v2104_v33 = vmov 0.0  }
  0x91   :  { %2033 = vmatpush3.bf16.msra.mxu0 %v2188_v22  ;;  %v1201_v22 = vld [vmem:[%s2506_s3 + $0x48] sm:$0xff]  ;;  %1913 = vmatprep.subr.mxu1 %v2104_v33  ;;  %v2320_v36 = vpack.c.bf16 %v812_v32, %v811_v30  ;;  %v168_v38 = vrot.slane %v1832_v37, %v2191_v31  ;;  %v161_v39 = vcombine.high %v1832_v37, %v1832_v37 }
  0x92   :  { %v1381_v7 = vcombine.low %v1373_v6, %v1380_v2  ;;  %2035 = vmatprep.subr.bf16.mxu0 %v2034_v1  ;;  %v2046_v13 = vpack.c.bf16 %v1201_v22, %v1200_v12  ;;  %v1283_v25 = vrot.slane %v1268_v20, %v2191_v31  ;;  %1914 = vmatpush3.msra.mxu1 %v722_v34 }
  0x93   :  { %1915 = vmatprep.mubr.msk.f32.mxu1 %vm2105_vm3, %v2104_v33  ;;  %2007 = vmatprep.subr.bf16.mxu1 %v2320_v36  ;;  %v176_v40 = vcombine.high %v168_v38, %v168_v38  ;;  %v175_v41 = vrot.slane %v161_v39, %v2191_v31  ;;  %v184_v42 = vrot.slane %v168_v38, %v2191_v31 }
  0x94   :  { %1982 = vmatprep.mubr.f32.mxu0 %v1381_v7  ;;  %v1382_v26 = vcombine.low %v1292_v21, %v1283_v25  ;;  %v1294_v22 = vcombine.high %v1842_v4, %v1842_v4 }
  0x95   :  { %2037 = vmatpush3.bf16.msra.mxu0 %v2034_v1  ;;  %v198_v43 = vrot.slane %v176_v40, %v2191_v31  ;;  %v177_v44 = vcombine.high %v175_v41, %v175_v41  ;;  %v191_v45 = vrot.slane %v175_v41, %v2191_v31  ;;  %v206_v46 = vcombine.high %v184_v42, %v184_v42 }
  0x96   :  { %2039 = vmatprep.subr.bf16.mxu0 %v2038_v8  ;;  %v1389_v28 = vrot.slane %v1382_v26, %v2191_v31  ;;  %v1308_v16 = vrot.slane %v1294_v22, %v2191_v31 }
  0x97   :  { %v208_v47 = vcombine.high %v198_v43, %v198_v43  ;;  %v205_v48 = vrot.slane %v177_v44, %v2191_v31  ;;  %v207_v50 = vcombine.high %v191_v45, %v191_v45  ;;  %v347_v51 = vcombine.low %v198_v43, %v206_v46 }
  0x98   :  { %v1396_v29 = vrot.slane %v1389_v28, %v2191_v31  ;;  %v298_v53 = vcombine.low %v184_v42, %v198_v43  ;;  %v1834_v54 = vcombine.high %v184_v42, %v198_v43  ;;  %v2355_v62 = vrot.slane %v1308_v16, %v2191_v31 }
  0x99   :  { %2041 = vmatpush3.bf16.msra.mxu0 %v2038_v8  ;;  %v348_v52 = vcombine.low %v208_v47, %v191_v45  ;;  %v300_v55 = vcombine.low %v191_v45, %v205_v48  ;;  %v301_v56 = vcombine.low %v207_v50, %v184_v42  ;;  %v349_v57 = vcombine.low %v205_v48, %v207_v50 }
  0x9a   :  { %2043 = vmatprep.subr.bf16.mxu0 %v2042_v11  ;;  %v356_v58 = vrot.slane %v347_v51, %v2191_v31  ;;  %v308_v60 = vrot.slane %v298_v53, %v2191_v31  ;;  %v315_v63 = vrot.slane %v1834_v54, %v2191_v31  ;;  %v1301_v8 = vrot.slane %v1842_v4, %v2191_v31 }
  0x9b   :  { %v363_v59 = vrot.slane %v348_v52, %v2191_v31  ;;  %v322_v0 = vrot.slane %v300_v55, %v2191_v31  ;;  %v329_v1 = vrot.slane %v301_v56, %v2191_v31  ;;  %v370_v2 = vrot.slane %v349_v57, %v2191_v31 }
  0x9c   :  { %v330_v6 = vcombine.low %v308_v60, %v315_v63 }
  0x9d   :  { %2045 = vmatpush3.bf16.msra.mxu0 %v2042_v11  ;;  %v371_v3 = vcombine.low %v356_v58, %v363_v59  ;;  %v331_v7 = vcombine.low %v322_v0, %v329_v1  ;;  %v385_v10 = vrot.slane %v370_v2, %v2191_v31 }
  0x9e   :  { %2047 = vmatprep.subr.bf16.mxu0 %v2046_v13  ;;  %v338_v11 = vrot.slane %v330_v6, %v2191_v31 }
  0x9f   :  { %v378_v9 = vrot.slane %v371_v3, %v2191_v31  ;;  %v345_v12 = vrot.slane %v331_v7, %v2191_v31 }
  0xa1   :  { %2049 = vmatpush3.bf16.msra.mxu0 %v2046_v13  ;;  %v1309_v13 = vcombine.high %v1301_v8, %v1301_v8  ;;  %v386_v14 = vcombine.low %v378_v9, %v385_v10  ;;  %v346_v15 = vcombine.low %v338_v11, %v345_v12 }
  0xa2   :  { %2051 = vmatprep.subr.bf16.mxu0 %v2050_v17 }
  0xa3   :  { %v2352_v19 = vrot.slane %v1309_v13, %v2191_v31 }
  0xa5   :  { %2053 = vmatpush3.bf16.msra.mxu0 %v2050_v17  ;;  %v1316_v17 = vrot.slane %v1301_v8, %v2191_v31 }
  0xa6   :  { %2055 = vmatprep.subr.bf16.mxu0 %v2054_v23 }
  0xa7   :  { %v1331_v26 = vcombine.high %v1316_v17, %v1316_v17  ;;  %v1399_v30 = vcombine.low %v1316_v17, %v2352_v19  ;;  %v1844_v38 = vcombine.high %v1316_v17, %v2352_v19  ;;  %v1401_v42 = vcombine.low %v2355_v62, %v1316_v17 }
  0xa9   :  { %2057 = vmatpush3.bf16.msra.mxu0 %v2054_v23  ;;  %v1402_v51 = vcombine.low %v2352_v19, %v1331_v26  ;;  %v1409_v59 = vrot.slane %v1399_v30, %v2191_v31  ;;  %v1416_v17 = vrot.slane %v1844_v38, %v2191_v31 }
  0xaa   :  { %2059 = vmatprep.subr.bf16.mxu0 %v2058_v27 }
  0xab   :  { %v1430_v26 = vrot.slane %v1402_v51, %v2191_v31 }
  0xad   :  { %2061 = vmatpush3.bf16.msra.mxu0 %v2058_v27 }
  0xb0   :  { %1983 = vmatmul.mubr.f32.vlgmr.msra.gmra.mrb[2].mxu0 %v1396_v29  ;;  %v1332_v29 = vcombine.high %v2352_v19, %v2352_v19 }
 0x163   :  { %v1912_v18 = vpop.f32.mrb[0].mxu0 }
 0x164   :  { %v466_v20 = vadd.f32 %v1912_v18, %v386_v14  ;;  %v460_v21 = vpop.f32.mrb[1].mxu0 }
 0x165   :  { %v461_v23 = vadd.f32 %v460_v21, %v346_v15  ;;  %v1423_v21 = vrot.slane %v1401_v42, %v2191_v31 }
 0x166   :  { %v520_v24 = vcombine.high %v466_v20, %v466_v20  ;;  %v527_v25 = vrot.slane %v466_v20, %v2191_v31 }
 0x167   :  { %v471_v27 = vcombine.high %v461_v23, %v461_v23  ;;  %v478_v28 = vrot.slane %v461_v23, %v2191_v31 }
 0x168   :  { %v534_v32 = vrot.slane %v520_v24, %v2191_v31  ;;  %v535_v34 = vcombine.high %v527_v25, %v527_v25  ;;  %v543_v37 = vrot.slane %v527_v25, %v2191_v31 }
 0x169   :  { %v485_v39 = vrot.slane %v471_v27, %v2191_v31  ;;  %v486_v40 = vcombine.high %v478_v28, %v478_v28  ;;  %v494_v41 = vrot.slane %v478_v28, %v2191_v31 }
 0x16a   :  { %v536_v43 = vcombine.high %v534_v32, %v534_v32  ;;  %v550_v44 = vrot.slane %v534_v32, %v2191_v31  ;;  %v557_v45 = vrot.slane %v535_v34, %v2191_v31  ;;  %v565_v46 = vcombine.high %v543_v37, %v543_v37 }
 0x16b   :  { %v487_v47 = vcombine.high %v485_v39, %v485_v39  ;;  %v501_v48 = vrot.slane %v485_v39, %v2191_v31  ;;  %v508_v50 = vrot.slane %v486_v40, %v2191_v31  ;;  %v516_v57 = vcombine.high %v494_v41, %v494_v41 }
 0x16c   :  { %v564_v52 = vrot.slane %v536_v43, %v2191_v31  ;;  %v566_v53 = vcombine.high %v557_v45, %v557_v45  ;;  %v590_v54 = vmax.f32 %v557_v45, 0.0  ;;  %v591_v55 = vmax.f32 %v565_v46, 0.0 }
 0x16d   :  { %v515_v56 = vrot.slane %v487_v47, %v2191_v31  ;;  %v517_v58 = vcombine.high %v501_v48, %v501_v48  ;;  %v589_v60 = vmax.f32 %v543_v37, 0.0  ;;  %v593_v0 = vmax.f32 %v550_v44, 0.0 }
 0x16e   :  { %v592_v63 = vmax.f32 %v566_v53, 0.0  ;;  %v518_v1 = vcombine.high %v508_v50, %v508_v50  ;;  %v594_v2 = vmax.f32 %v564_v52, 0.0  ;;  %v658_v3 = vcombine.low %v590_v54, %v591_v55 }
 0x16f   :  { %v519_v4 = vcombine.high %v515_v56, %v515_v56  ;;  %v582_v6 = vmax.f32 %v508_v50, 0.0  ;;  %v581_v8 = vmax.f32 %v494_v41, 0.0  ;;  %v583_v9 = vmax.f32 %v516_v57, 0.0 }
 0x170   :  { %v659_v7 = vcombine.low %v592_v63, %v593_v0  ;;  %v584_v10 = vmax.f32 %v518_v1, 0.0  ;;  %v585_v11 = vmax.f32 %v501_v48, 0.0  ;;  %v586_v12 = vmax.f32 %v515_v56, 0.0 }
 0x171   :  { %v587_v22 = vmax.f32 %v517_v58, 0.0  ;;  %v588_v13 = vmax.f32 %v519_v4, 0.0  ;;  %v609_v15 = vcombine.low %v581_v8, %v582_v6  ;;  %v687_v18 = vrot.slane %v594_v2, %v2191_v31  ;;  %v813_v8 = vld [vmem:[%s2505_s2 + $0x10] sm:$0xff] }
 0x172   :  { %v680_v14 = vrot.slane %v659_v7, %v2191_v31  ;;  %v610_v16 = vcombine.low %v583_v9, %v584_v10  ;;  %v611_v19 = vcombine.low %v585_v11, %v586_v12  ;;  %v673_v23 = vrot.slane %v658_v3, %v2191_v31  ;;  %v814_v9 = vld [vmem:[%s2505_s2 + $0x18] sm:$0xff] }
 0x173   :  { %v657_v20 = vcombine.low %v588_v13, %v589_v60  ;;  %v618_v24 = vrot.slane %v609_v15, %v2191_v31  ;;  %v639_v30 = vrot.slane %v587_v22, %v2191_v31  ;;  %v1448_v40 = vcombine.low %v1332_v29, %v2355_v62 }
 0x174   :  { %v625_v25 = vrot.slane %v610_v16, %v2191_v31  ;;  %v689_v27 = vcombine.low %v680_v14, %v687_v18  ;;  %v632_v28 = vrot.slane %v611_v19, %v2191_v31  ;;  %v1431_v41 = vcombine.low %v1409_v59, %v1416_v17  ;;  %v815_v18 = vld [vmem:[%s2505_s2 + $0x20] sm:$0xff]  ;;  %v816_v19 = vld [vmem:[%s2505_s2 + $0x28] sm:$0xff] }
 0x175   :  { %v666_v32 = vrot.slane %v657_v20, %v2191_v31  ;;  %v1432_v44 = vcombine.low %v1423_v21, %v1430_v26  ;;  %v1455_v48 = vrot.slane %v1448_v40, %v2191_v31  ;;  %v2010_v17 = vpack.c.bf16 %v814_v9, %v813_v8 }
 0x176   :  { %v640_v34 = vcombine.low %v618_v24, %v625_v25  ;;  %v641_v37 = vcombine.low %v632_v28, %v639_v30  ;;  %v703_v42 = vrot.slane %v689_v27, %v2191_v31  ;;  %v1439_v50 = vrot.slane %v1431_v41, %v2191_v31 }
 0x177   :  { %v688_v38 = vcombine.low %v666_v32, %v673_v23  ;;  %v1446_v51 = vrot.slane %v1432_v44, %v2191_v31  ;;  %v1462_v54 = vrot.slane %v1455_v48, %v2191_v31  ;;  %v2014_v28 = vpack.c.bf16 %v816_v19, %v815_v18 }
 0x178   :  { %v648_v39 = vrot.slane %v640_v34, %v2191_v31  ;;  %v655_v43 = vrot.slane %v641_v37, %v2191_v31 }
 0x179   :  { %v696_v45 = vrot.slane %v688_v38, %v2191_v31  ;;  %v1447_v57 = vcombine.low %v1439_v50, %v1446_v51  ;;  %v817_v38 = vld [vmem:[%s2505_s2 + $0x30] sm:$0xff] }
 0x17a   :  { %v656_v46 = vcombine.low %v648_v39, %v655_v43  ;;  %v818_v39 = vld [vmem:[%s2505_s2 + $0x38] sm:$0xff] }
 0x17b   :  { %v704_v47 = vcombine.low %v696_v45, %v703_v42 }
 0x17c   :  { %v708_v52 = vsel %vm707_vm4, %v656_v46, -inf }
 0x17d   :  { %v715_v53 = vsel %vm707_vm4, %v704_v47, -inf  ;;  %v709_v62 = vrot.slane %v708_v52, 4  ;;  %v2018_v47 = vpack.c.bf16 %v818_v39, %v817_v38 }
 0x17e   :  { %v716_v29 = vrot.slane %v715_v53, 4 }
 0x17f   :  { %v710_v55 = vmax.f32 %v708_v52, %v709_v62  ;;  %v820_v62 = vld [vmem:[%s2505_s2 + $0x48] sm:$0xff] }
 0x180   :  { %v717_v56 = vmax.f32 %v715_v53, %v716_v29  ;;  %v819_v53 = vld [vmem:[%s2505_s2 + $0x40] sm:$0xff] }
 0x181   :  { %v711_v58 = vrot.slane %v710_v55, 2 }
 0x182   :  { %v718_v59 = vrot.slane %v717_v56, 2 }
 0x183   :  { %v1984_v60 = vpop.f32.mrb[2].mxu0  ;;  %v712_v1 = vmax.f32 %v710_v55, %v711_v58  ;;  %v2022_v58 = vpack.c.bf16 %v820_v62, %v819_v53 }
 0x184   :  { %v1537_v63 = vadd.f32 %v1984_v60, %v1462_v54  ;;  %v1531_v0 = vpop.f32.mrb[3].mxu0  ;;  %v719_v2 = vmax.f32 %v717_v56, %v718_v59 }
 0x185   :  { %v1532_v3 = vadd.f32 %v1531_v0, %v1447_v57  ;;  %v713_v6 = vrot.slane %v712_v1, 1  ;;  %v846_v57 = vcombine.high %v2203_v49, %v2203_v49 }
 0x186   :  { %v1597_v4 = vrot.slane %v1537_v63, %v2191_v31  ;;  %v720_v7 = vrot.slane %v719_v2, 1 }
 0x187   :  { %v1542_v10 = vcombine.high %v1532_v3, %v1532_v3  ;;  %v1549_v11 = vrot.slane %v1532_v3, %v2191_v31  ;;  %v714_v22 = vmax.f32 %v712_v1, %v713_v6  ;;  %v821_v1 = vld [vmem:[%s2505_s2 + $0x50] sm:$0xff]  ;;  %v860_v6 = vrot.slane %v846_v57, %v2193_v35 }
 0x188   :  { %v1598_v12 = vcombine.high %v1597_v4, %v1597_v4  ;;  %v721_v13 = vmax.f32 %v719_v2, %v720_v7  ;;  %v1605_v26 = vrot.slane %v1597_v4, %v2191_v31  ;;  %v822_v2 = vld [vmem:[%s2505_s2 + $0x58] sm:$0xff]  ;;  %v861_v7 = vcombine.high %v2212_v61, %v2212_v61 }
 0x189   :  { %v1556_v14 = vrot.slane %v1542_v10, %v2191_v31  ;;  %v1557_v15 = vcombine.high %v1549_v11, %v1549_v11  ;;  %v1565_v16 = vrot.slane %v1549_v11, %v2191_v31  ;;  %v2026_v11 = vpack.c.bf16 %v822_v2, %v821_v1 }
 0x18a   :  { %v726_v20 = vsel %vm725_vm5, %v721_v13, %v714_v22  ;;  %v1612_v27 = vrot.slane %v1598_v12, %v2191_v31  ;;  %v1631_v45 = vmax.f32 %v1605_v26, 0.0 }
 0x18b   :  { %v1558_v21 = vcombine.high %v1556_v14, %v1556_v14  ;;  %v1572_v23 = vrot.slane %v1556_v14, %v2191_v31  ;;  %v1579_v24 = vrot.slane %v1557_v15, %v2191_v31  ;;  %v1587_v25 = vcombine.high %v1565_v16, %v1565_v16  ;;  %1916 = vmatmul.mubr.msk.f32.vlgmr.msra.gmra.mrb[0].mxu1 %vm727_vm6, %v726_v20 }
 0x18c   :  { %2009 = vmatpush3.bf16.msra.mxu1 %v2320_v36  ;;  %1942 = vmatprep.mubr.msk.f32.mxu1 %vm931_vm2, %v2267_v5  ;;  %v1623_v40 = vmax.f32 %v1565_v16, 0.0  ;;  %v1632_v48 = vmax.f32 %v1612_v27, 0.0  ;;  %v896_v14 = vcombine.low %v861_v7, %v860_v6 }
 0x18d   :  { %v1586_v30 = vrot.slane %v1558_v21, %v2191_v31  ;;  %v1588_v32 = vcombine.high %v1572_v23, %v1572_v23  ;;  %v1589_v34 = vcombine.high %v1579_v24, %v1579_v24  ;;  %v1624_v37 = vmax.f32 %v1579_v24, 0.0  ;;  %2011 = vmatprep.subr.bf16.mxu1 %v2010_v17 }
 0x18e   :  { %v1625_v36 = vmax.f32 %v1587_v25, 0.0  ;;  %v1627_v41 = vmax.f32 %v1572_v23, 0.0  ;;  %v1704_v59 = vrot.slane %v1632_v48, %v2191_v31  ;;  %v903_v19 = vrot.slane %v896_v14, %v2193_v35 }
 0x18f   :  { %v1590_v42 = vcombine.high %v1586_v30, %v1586_v30  ;;  %v1626_v5 = vmax.f32 %v1589_v34, 0.0  ;;  %v1628_v43 = vmax.f32 %v1586_v30, 0.0  ;;  %v1629_v44 = vmax.f32 %v1588_v32, 0.0  ;;  %v1838_v30 = vld [vmem:[%s2507_s4 + $0x1] ss:$0 sm:$0xff] }
 0x190   :  { %v1643_v46 = vcombine.low %v1623_v40, %v1624_v37  ;;  %2013 = vmatpush3.bf16.msra.mxu1 %v2010_v17  ;;  %v1665_v55 = vrot.slane %v1627_v41, %v2191_v31  ;;  %v1719_v8 = vrot.slane %v1704_v59, %v2191_v31  ;;  %v863_v32 = vcombine.high %v1838_v30, %v1838_v30 }
 0x191   :  { %v1630_v50 = vmax.f32 %v1590_v42, 0.0  ;;  %v1644_v51 = vcombine.low %v1625_v36, %v1626_v5  ;;  %v1682_v52 = vcombine.low %v1628_v43, %v1629_v44  ;;  %2015 = vmatprep.subr.bf16.mxu1 %v2014_v28  ;;  %v870_v34 = vrot.slane %v1838_v30, %v2193_v35 }
 0x192   :  { %v1651_v29 = vrot.slane %v1643_v46, %v2191_v31  ;;  %v1680_v3 = vrot.slane %v1665_v55, %v2191_v31  ;;  %v877_v37 = vrot.slane %v863_v32, %v2193_v35 }
 0x193   :  { %v1658_v54 = vrot.slane %v1644_v51, %v2191_v31  ;;  %v1683_v56 = vcombine.low %v1630_v50, %v1631_v45  ;;  %v1690_v63 = vrot.slane %v1682_v52, %v2191_v31  ;;  %v878_v38 = vcombine.high %v870_v34, %v870_v34 }
 0x194   :  { %2017 = vmatpush3.bf16.msra.mxu1 %v2014_v28  ;;  %v1105_v28 = vld [vmem:[%s2508_s5 + $0x8] sm:$0xff]  ;;  %v905_v40 = vcombine.low %v877_v37, %v870_v34 }
 0x195   :  { %v1666_v60 = vcombine.low %v1651_v29, %v1658_v54  ;;  %v1697_v0 = vrot.slane %v1683_v56, %v2191_v31  ;;  %2019 = vmatprep.subr.bf16.mxu1 %v2018_v47  ;;  %v904_v39 = vcombine.low %v870_v34, %v878_v38  ;;  %v921_v36 = vcombine.low %v878_v38, %v877_v37 }
 0x196   :  { %v919_v42 = vrot.slane %v905_v40, %v2193_v35 }
 0x197   :  { %v1673_v49 = vrot.slane %v1666_v60, %v2191_v31  ;;  %v1705_v4 = vcombine.low %v1690_v63, %v1697_v0  ;;  %v912_v41 = vrot.slane %v904_v39, %v2193_v35  ;;  %v928_v5 = vrot.slane %v921_v36, %v2193_v35 }
 0x198   :  { %2021 = vmatpush3.bf16.msra.mxu1 %v2018_v47 }
 0x199   :  { %v1681_v9 = vcombine.low %v1673_v49, %v1680_v3  ;;  %v1712_v10 = vrot.slane %v1705_v4, %v2191_v31  ;;  %2023 = vmatprep.subr.bf16.mxu1 %v2022_v58  ;;  %v920_v43 = vcombine.low %v912_v41, %v919_v42 }
 0x19b   :  { %v1720_v12 = vcombine.low %v1712_v10, %v1719_v8  ;;  %v1724_v22 = vsel %vm1723_vm7, %v1681_v9, -inf }
 0x19c   :  { %2025 = vmatpush3.bf16.msra.mxu1 %v2022_v58  ;;  %v1725_v13 = vrot.slane %v1724_v22, 4 }
 0x19d   :  { %2027 = vmatprep.subr.bf16.mxu1 %v2026_v11  ;;  %v1731_v15 = vsel %vm1723_vm7, %v1720_v12, -inf }
 0x19e   :  { %v1726_v16 = vmax.f32 %v1724_v22, %v1725_v13  ;;  %v1732_v17 = vrot.slane %v1731_v15, 4 }
 0x1a0   :  { %2029 = vmatpush3.bf16.msra.mxu1 %v2026_v11  ;;  %v1727_v61 = vrot.slane %v1726_v16, 2  ;;  %v1733_v18 = vmax.f32 %v1731_v15, %v1732_v17 }
 0x1a1   :  { %1945 = vmatprep.subr.mxu1 %v2104_v33 }
 0x1a2   :  { %v1728_v20 = vmax.f32 %v1726_v16, %v1727_v61  ;;  %v1734_v31 = vrot.slane %v1733_v18, 2 }
 0x1a3   :  { %1943 = vmatmul.mubr.msk.f32.vlgmr.msra.gmra.mrb[2].mxu1 %vm931_vm2, %v903_v19  ;;  %v1831_v19 = vld [vmem:[%s2509_s6] ss:$0 sm:$0xff] }
 0x1a4   :  { %1947 = vmatprep.mubr.msk.f32.mxu1 %vm2105_vm3, %v2104_v33  ;;  %v1729_v21 = vrot.slane %v1728_v20, 1  ;;  %v1735_v23 = vmax.f32 %v1733_v18, %v1734_v31  ;;  %1946 = vmatpush3.msra.mxu1 %v1105_v28  ;;  %v1738_v18 = vld [vmem:[%s2508_s5 + $0x10] sm:$0xff]  ;;  %s2075_s5 = scalar_lea.vmem %s1824_s15, 32 }
 0x1a5   :  { %1985 = vmatprep.subr.mxu1 %v2104_v33  ;;  %p2076_p0 = scmp.ne.s32.totalorder %s1824_s15, %s2075_s5  ;;  %p2081_p2 = scmp.lt.s32.totalorder %s2075_s5, %s2075_s5 }
 0x1a6   :  { %v1736_v24 = vrot.slane %v1735_v23, 1  ;;  %v1730_v25 = vmax.f32 %v1728_v20, %v1729_v21 }
 0x1a7   :  { %p2082_p3 = por %p2081_p2, %p2080_p1 }
 0x1a8   :  { %v1737_v26 = vmax.f32 %v1735_v23, %v1736_v24 }
 0x1a9   :  { %p2083_p4 = pnand %p2082_p3, %p2076_p0 }
 0x1aa   :  { %v1741_v27 = vsel %vm725_vm5, %v1737_v26, %v1730_v25 }
 0x276   :  { %v1944_v44 = vpop.f32.mrb[2].mxu1 }
 0x277   :  { %v1008_v45 = vadd.f32 %v1944_v44, %v928_v5  ;;  %v1002_v46 = vpop.f32.mrb[3].mxu1 }
 0x278   :  { %v1003_v47 = vadd.f32 %v1002_v46, %v920_v43 }
 0x279   :  { %v1036_v48 = vrot.slane %v1008_v45, %v2193_v35 }
 0x27a   :  { %v1013_v50 = vcombine.high %v1003_v47, %v1003_v47  ;;  %v1020_v51 = vrot.slane %v1003_v47, %v2193_v35 }
 0x27b   :  { %v1037_v52 = vcombine.high %v1036_v48, %v1036_v48  ;;  %v1048_v57 = vmax.f32 %v1036_v48, 0.0 }
 0x27c   :  { %v1027_v53 = vrot.slane %v1013_v50, %v2193_v35  ;;  %v1028_v62 = vcombine.high %v1020_v51, %v1020_v51  ;;  %v1044_v54 = vmax.f32 %v1020_v51, 0.0 }
 0x27d   :  { %v1049_v58 = vmax.f32 %v1037_v52, 0.0 }
 0x27e   :  { %v1029_v29 = vcombine.high %v1027_v53, %v1027_v53  ;;  %v1045_v55 = vmax.f32 %v1028_v62, 0.0  ;;  %v1046_v56 = vmax.f32 %v1027_v53, 0.0 }
 0x27f   :  { %v1086_v2 = vrot.slane %v1049_v58, %v2193_v35 }
 0x280   :  { %v1047_v59 = vmax.f32 %v1029_v29, 0.0  ;;  %v1056_v60 = vcombine.low %v1044_v54, %v1045_v55  ;;  %v1070_v0 = vrot.slane %v1046_v56, %v2193_v35 }
 0x282   :  { %v1063_v63 = vrot.slane %v1056_v60, %v2193_v35  ;;  %v1072_v1 = vcombine.low %v1047_v59, %v1048_v57 }
 0x284   :  { %v1071_v49 = vcombine.low %v1063_v63, %v1070_v0  ;;  %v1079_v3 = vrot.slane %v1072_v1, %v2193_v35 }
 0x286   :  { %v1087_v4 = vcombine.low %v1079_v3, %v1086_v2  ;;  %v1091_v6 = vsel %vm1090_vm8, %v1071_v49, -inf }
 0x287   :  { %v1092_v7 = vrot.slane %v1091_v6, 4 }
 0x288   :  { %v1098_v8 = vsel %vm1090_vm8, %v1087_v4, -inf }
 0x289   :  { %v1093_v9 = vmax.f32 %v1091_v6, %v1092_v7  ;;  %v1099_v10 = vrot.slane %v1098_v8, 4 }
 0x28b   :  { %v1094_v11 = vrot.slane %v1093_v9, 2  ;;  %v1100_v12 = vmax.f32 %v1098_v8, %v1099_v10 }
 0x28d   :  { %v1095_v22 = vmax.f32 %v1093_v9, %v1094_v11  ;;  %v1101_v13 = vrot.slane %v1100_v12, 2 }
 0x28f   :  { %v1096_v14 = vrot.slane %v1095_v22, 1  ;;  %v1102_v15 = vmax.f32 %v1100_v12, %v1101_v13 }
 0x291   :  { %v1103_v16 = vrot.slane %v1102_v15, 1  ;;  %v1097_v17 = vmax.f32 %v1095_v22, %v1096_v14 }
 0x293   :  { %v1104_v61 = vmax.f32 %v1102_v15, %v1103_v16 }
 0x295   :  { %v1108_v35 = vsel %vm725_vm5, %v1104_v61, %v1097_v17 }
 0x296   :  { %1948 = vmatmul.mubr.msk.f32.vlgmr.msra.gmra.mrb[0].mxu1 %vm727_vm6, %v1108_v35 }
 0x297   :  { %1986 = vmatpush3.msra.mxu1 %v1738_v18  ;;  %1987 = vmatprep.mubr.msk.f32.mxu1 %vm2105_vm3, %v2104_v33 }
 0x29e   :  { %1988 = vmatmul.mubr.msk.f32.vlgmr.msra.gmra.mrb[0].mxu1 %vm727_vm6, %v1741_v27 }
 0x371   :  { %v1810_v20 = vpop.f32.mrb[0].mxu1 }
 0x372   :  { %v2062_v31 = vadd.f32 %v1831_v19, %v1810_v20  ;;  %v1989_v21 = vpop.f32.mrb[1].mxu1 }
 0x374   :  { %1816 = vst.msk [vmem:[#allocation2] sm:$0x3] %vm1815_vm9, %v2062_v31 }
 0x375   :  { %2086 = shalt.err (!%p2083_p4)
}
 0x376   :  { %s2087_s18 = scalar_lea.hbm %s2510_s7, 32 }
 0x377   :  { %p2088_p5 = scmp.ne.s32.totalorder %s2510_s7, %s2087_s18  ;;  %p2091_p6 = scmp.lt.u32.totalorder %s2087_s18, %s2510_s7 }
 0x379   :  { %p2093_p7 = pnand %p2091_p6, %p2088_p5 }
 0x37b   :  { %2096 = shalt.err (!%p2093_p7)
}
 0x37c   :  { %1826 = dma.vmem_to_hbm [thread:$0]  %s1824_s15, 32, %s2510_s7, [#allocation3]  }
 0x37d   :  { %2097 = dma.done.wait [#allocation3], 32  }
 0x37e   :  { %2098 = vsyncadd [#allocation3], 4294967264 }
 0x37f   :  { %1830 = vsyncpa [#allocation3], 1 }

</bundles_post_ra>
